<compile_context>
chip_gen: v6e
topology: v6e:2x2x1
jax: 0.10.0
libtpu: 0.0.40
codegen_flags: <defaults>
</compile_context>

<pallas_src>
import functools

import jax
import jax.numpy as jnp
from jax.experimental import pallas as pl
from jax.experimental.pallas import tpu as pltpu


def _round_up(x, m):
    return ((x + m - 1) // m) * m


def _cdiv(a, b):
    return -(-a // b)


def _vae_kernel(max_action, latent_dim, out_pad,
                # batch-tiled inputs
                state_ref, act_ref, noise_ref,
                # resident weights / biases
                e1w_s_ref, e1w_a_ref, e1b_ref,
                e2w_ref, e2b_ref,
                hw_ref, hb_ref,
                d1w_s_ref, d1w_z_ref, d1b_ref,
                d2w_ref, d2b_ref,
                d3w_ref, d3b_ref,
                # packed bf16 output slab
                out_ref):
    # (no-op casts if the caller already supplies bf16 state/action)
    s = state_ref[...].astype(jnp.bfloat16)
    a = act_ref[...].astype(jnp.bfloat16)

    # ---- encoder ----
    # e1(cat([state, action_seq], 1)) == s @ W_s + a @ W_a + b  (split matmuls)
    h1 = (jnp.dot(s, e1w_s_ref[...], preferred_element_type=jnp.float32)
          + jnp.dot(a, e1w_a_ref[...], preferred_element_type=jnp.float32))
    h1 = jnp.maximum(h1 + e1b_ref[...], 0.0)

    h2 = jnp.dot(h1.astype(jnp.bfloat16), e2w_ref[...],
                 preferred_element_type=jnp.float32)
    h2 = jnp.maximum(h2 + e2b_ref[...], 0.0)

    # fused mean / log_std head: one [128, 2*latent] matmul
    head = jnp.dot(h2.astype(jnp.bfloat16), hw_ref[...],
                   preferred_element_type=jnp.float32) + hb_ref[...]
    mean = head[:, :latent_dim]
    log_std = head[:, latent_dim:]
    # NOTE: the spec module exponentiates log_std without clamping; we match it.
    std = jnp.exp(log_std)

    # ---- reparameterize ----
    z = mean + std * noise_ref[...]

    # ---- decoder ----
    # d1(cat([state, z], 1)) == s @ W_s + z @ W_z + b.
    # The state half is computed HERE (K=16 matmul) so no wide f32 value is
    # carried live across the encoder (cuts vreg spill traffic).
    g1 = (jnp.dot(s, d1w_s_ref[...], preferred_element_type=jnp.float32)
          + jnp.dot(z.astype(jnp.bfloat16), d1w_z_ref[...],
                    preferred_element_type=jnp.float32))
    g1 = jnp.maximum(g1 + d1b_ref[...], 0.0)

    g2 = jnp.dot(g1.astype(jnp.bfloat16), d2w_ref[...],
                 preferred_element_type=jnp.float32)
    g2 = jnp.maximum(g2 + d2b_ref[...], 0.0)

    u = jnp.dot(g2.astype(jnp.bfloat16), d3w_ref[...],
                preferred_element_type=jnp.float32) + d3b_ref[...]
    u = max_action * jnp.tanh(u)

    # ---- single lane-dense packed store (bf16): [u | mean | std | pad] ----
    pieces = [u.astype(jnp.bfloat16),
              mean.astype(jnp.bfloat16),
              std.astype(jnp.bfloat16)]
    if out_pad > 0:
        pieces.append(jnp.zeros((u.shape[0], out_pad), jnp.bfloat16))
    out_ref[...] = jnp.concatenate(pieces, axis=1)


def init_vae_params(key, state_dim, action_dim, latent_dim, n_action_steps):
    """Deterministic synthetic parameters (PyTorch-like uniform fan-in init).

    Weights are stored [in_features, out_features]; biases as [1, out]."""
    action_seq_dim = action_dim * n_action_steps
    layer_dims = {
        "e1": (state_dim + action_seq_dim, 256),
        "e2": (256, 128),
        "mean": (128, latent_dim),
        "log_std": (128, latent_dim),
        "d1": (state_dim + latent_dim, 128),
        "d2": (128, 256),
        "d3": (256, action_seq_dim),
    }
    params = {}
    for name, (fan_in, fan_out) in layer_dims.items():
        key, kw, kb = jax.random.split(key, 3)
        bound = 1.0 / (fan_in ** 0.5)
        params[name + "_w"] = jax.random.uniform(
            kw, (fan_in, fan_out), jnp.float32, -bound, bound)
        params[name + "_b"] = jax.random.uniform(
            kb, (1, fan_out), jnp.float32, -bound, bound)
    return params


def pack_vae_params(params, state_dim):
    """One-time packing: split cat-weights, fuse mean/log_std head, bf16-cast."""
    e1w = params["e1_w"]
    d1w = params["d1_w"]
    bf = lambda w: w.astype(jnp.bfloat16)
    return {
        "e1w_s": bf(e1w[:state_dim]),           # [state_dim, 256]
        "e1w_a": bf(e1w[state_dim:]),           # [action_seq_dim, 256]
        "e1_b": params["e1_b"],
        "e2_w": bf(params["e2_w"]),
        "e2_b": params["e2_b"],
        # fused mean/log_std head: [128, 2*latent]
        "head_w": bf(jnp.concatenate([params["mean_w"], params["log_std_w"]], axis=1)),
        "head_b": jnp.concatenate([params["mean_b"], params["log_std_b"]], axis=1),
        "d1w_s": bf(d1w[:state_dim]),           # [state_dim, 128]
        "d1w_z": bf(d1w[state_dim:]),           # [latent_dim, 128]
        "d1_b": params["d1_b"],
        "d2_w": bf(params["d2_w"]),
        "d2_b": params["d2_b"],
        "d3_w": bf(params["d3_w"]),
        "d3_b": params["d3_b"],
    }


def vae_forward(state, action_seq, noise, packed, *,
                state_dim, action_dim, latent_dim, max_action, n_action_steps,
                block_batch=1024):
    """Pallas equivalent of VAE.forward(state, action_seq) -> (u, mean, std)."""
    batch = state.shape[0]
    asd = action_dim * n_action_steps
    out_width = asd + 2 * latent_dim
    out_padded = _round_up(max(out_width, 128), 128)
    out_pad = out_padded - out_width

    # ---- batch tiling (perf review):
    #  * big default tile (amortize ~0.35us/step overhead; VMEM is a non-issue)
    #  * >=2 (even #) tiles when the batch is large -> both v7x TensorCores busy
    #  * tile chosen so wrapper padding is <= ~15 rows, never a full tile
    n_tiles = max(_cdiv(batch, block_batch), 1)
    if n_tiles == 1 and batch >= 256:
        n_tiles = 2
    if n_tiles > 1 and n_tiles % 2:
        n_tiles += 1
    tb = _round_up(_cdiv(batch, n_tiles), 16)    # 16: bf16-output sublane packing
    batch_p = _round_up(batch, tb)
    grid = (batch_p // tb,)

    def pad_rows(x):
        pad = batch_p - x.shape[0]
        return x if pad == 0 else jnp.pad(x, ((0, pad), (0, 0)))

    state_p = pad_rows(state)
    act_p = pad_rows(action_seq)
    noise_p = pad_rows(noise)

    def batch_spec(width):
        return pl.BlockSpec((tb, width), lambda i: (i, 0))

    def const_spec(arr):
        # full-array block, resident in VMEM across all batch tiles
        return pl.BlockSpec(arr.shape, lambda i: (0, 0))

    weights = (packed["e1w_s"], packed["e1w_a"], packed["e1_b"],
               packed["e2_w"], packed["e2_b"],
               packed["head_w"], packed["head_b"],
               packed["d1w_s"], packed["d1w_z"], packed["d1_b"],
               packed["d2_w"], packed["d2_b"],
               packed["d3_w"], packed["d3_b"])

    kernel = functools.partial(_vae_kernel, float(max_action), latent_dim, out_pad)

    out = pl.pallas_call(
        kernel,
        grid=grid,
        out_shape=jax.ShapeDtypeStruct((batch_p, out_padded), jnp.bfloat16),
        in_specs=[batch_spec(state_dim), batch_spec(asd), batch_spec(latent_dim)]
                 + [const_spec(w) for w in weights],
        out_specs=batch_spec(out_padded),
        compiler_params=pltpu.CompilerParams(
            dimension_semantics=("parallel",)),
    )(state_p, act_p, noise_p, *weights)

    u = out[:batch, :asd].astype(jnp.float32).reshape(-1, n_action_steps, action_dim)
    mean = out[:batch, asd:asd + latent_dim].astype(jnp.float32)
    std = out[:batch, asd + latent_dim:asd + 2 * latent_dim].astype(jnp.float32)
    return u, mean, std


def _vae_reference(state, action_seq, noise, params, *,
                   latent_dim, max_action, n_action_steps, action_dim):
    """Pure-JAX f32 reference of the PyTorch module (for a sanity check)."""
    lin = lambda x, n: x @ params[n + "_w"] + params[n + "_b"]
    h = jax.nn.relu(lin(jnp.concatenate([state, action_seq], axis=1), "e1"))
    h = jax.nn.relu(lin(h, "e2"))
    mean = lin(h, "mean")
    std = jnp.exp(lin(h, "log_std"))
    z = mean + std * noise
    g = jax.nn.relu(lin(jnp.concatenate([state, z], axis=1), "d1"))
    g = jax.nn.relu(lin(g, "d2"))
    u = max_action * jnp.tanh(lin(g, "d3"))
    return u.reshape(-1, n_action_steps, action_dim), mean, std


if __name__ == "__main__":
    # Small, module-consistent shapes.
    batch = 2
    state_dim = 16
    action_dim = 4
    n_action_steps = 8           # action_seq_dim = 32
    latent_dim = 32
    max_action = 1.0
    action_seq_dim = action_dim * n_action_steps

    key = jax.random.PRNGKey(0)
    k_params, k_state, k_act, k_noise = jax.random.split(key, 4)

    params = init_vae_params(k_params, state_dim, action_dim, latent_dim,
                             n_action_steps)
    packed = pack_vae_params(params, state_dim)

    state = jax.random.normal(k_state, (batch, state_dim), jnp.float32)
    action_seq = jax.random.normal(k_act, (batch, action_seq_dim), jnp.float32)
    # torch.randn_like(std) equivalent, generated deterministically in JAX glue.
    noise = jax.random.normal(k_noise, (batch, latent_dim), jnp.float32)

    u, mean, std = vae_forward(
        state, action_seq, noise, packed,
        state_dim=state_dim, action_dim=action_dim, latent_dim=latent_dim,
        max_action=max_action, n_action_steps=n_action_steps)
    jax.block_until_ready((u, mean, std))

    assert u.shape == (batch, n_action_steps, action_dim)
    assert mean.shape == (batch, latent_dim)
    assert std.shape == (batch, latent_dim)
    assert bool(jnp.all(jnp.isfinite(u))) and bool(jnp.all(jnp.isfinite(std)))

    # Loose correctness check against a pure-JAX f32 reference (kernel uses
    # bf16 MXU operands and a bf16 output slab -> expect ~1e-2 level diffs).
    u_r, mean_r, std_r = _vae_reference(
        state, action_seq, noise, params,
        latent_dim=latent_dim, max_action=max_action,
        n_action_steps=n_action_steps, action_dim=action_dim)
    err = 0.0
    for got, ref in ((u, u_r), (mean, mean_r), (std, std_r)):
        err = max(err, float(jnp.max(jnp.abs(got - ref) / (jnp.abs(ref) + 1.0))))
    assert err < 0.1, f"scaled max error too large: {err}"

    print("KERNEL_OK")
</pallas_src>

<mosaic_0001>
module attributes {stable_mosaic.version = 11 : i64} {
  func.func @_vae_kernel(%arg0: i32, %arg1: memref<16x16xf32, #tpu.memory_space<vmem>>, %arg2: memref<16x32xf32, #tpu.memory_space<vmem>>, %arg3: memref<16x32xf32, #tpu.memory_space<vmem>>, %arg4: memref<16x256xbf16, #tpu.memory_space<vmem>>, %arg5: memref<32x256xbf16, #tpu.memory_space<vmem>>, %arg6: memref<1x256xf32, #tpu.memory_space<vmem>>, %arg7: memref<256x128xbf16, #tpu.memory_space<vmem>>, %arg8: memref<1x128xf32, #tpu.memory_space<vmem>>, %arg9: memref<128x64xbf16, #tpu.memory_space<vmem>>, %arg10: memref<1x64xf32, #tpu.memory_space<vmem>>, %arg11: memref<16x128xbf16, #tpu.memory_space<vmem>>, %arg12: memref<32x128xbf16, #tpu.memory_space<vmem>>, %arg13: memref<1x128xf32, #tpu.memory_space<vmem>>, %arg14: memref<128x256xbf16, #tpu.memory_space<vmem>>, %arg15: memref<1x256xf32, #tpu.memory_space<vmem>>, %arg16: memref<256x32xbf16, #tpu.memory_space<vmem>>, %arg17: memref<1x32xf32, #tpu.memory_space<vmem>>, %arg18: memref<16x128xbf16, #tpu.memory_space<vmem>>) attributes {dimension_semantics = [#tpu.dimension_semantics<parallel>], iteration_bounds = array<i64: 1>, scalar_prefetch = 0 : i64, scratch_operands = 0 : i64, tpu.core_type = #tpu.core_type<tc>, window_params = [{transform_indices = @transform_0, window_bounds = array<i64: 16, 16>}, {transform_indices = @transform_1, window_bounds = array<i64: 16, 32>}, {transform_indices = @transform_2, window_bounds = array<i64: 16, 32>}, {pipeline_mode = #tpu.pipeline_mode<synchronous>, transform_indices = @transform_3, window_bounds = array<i64: 16, 256>}, {pipeline_mode = #tpu.pipeline_mode<synchronous>, transform_indices = @transform_4, window_bounds = array<i64: 32, 256>}, {pipeline_mode = #tpu.pipeline_mode<synchronous>, transform_indices = @transform_5, window_bounds = array<i64: 1, 256>}, {pipeline_mode = #tpu.pipeline_mode<synchronous>, transform_indices = @transform_6, window_bounds = array<i64: 256, 128>}, {pipeline_mode = #tpu.pipeline_mode<synchronous>, transform_indices = @transform_7, window_bounds = array<i64: 1, 128>}, {pipeline_mode = #tpu.pipeline_mode<synchronous>, transform_indices = @transform_8, window_bounds = array<i64: 128, 64>}, {pipeline_mode = #tpu.pipeline_mode<synchronous>, transform_indices = @transform_9, window_bounds = array<i64: 1, 64>}, {pipeline_mode = #tpu.pipeline_mode<synchronous>, transform_indices = @transform_10, window_bounds = array<i64: 16, 128>}, {pipeline_mode = #tpu.pipeline_mode<synchronous>, transform_indices = @transform_11, window_bounds = array<i64: 32, 128>}, {pipeline_mode = #tpu.pipeline_mode<synchronous>, transform_indices = @transform_12, window_bounds = array<i64: 1, 128>}, {pipeline_mode = #tpu.pipeline_mode<synchronous>, transform_indices = @transform_13, window_bounds = array<i64: 128, 256>}, {pipeline_mode = #tpu.pipeline_mode<synchronous>, transform_indices = @transform_14, window_bounds = array<i64: 1, 256>}, {pipeline_mode = #tpu.pipeline_mode<synchronous>, transform_indices = @transform_15, window_bounds = array<i64: 256, 32>}, {pipeline_mode = #tpu.pipeline_mode<synchronous>, transform_indices = @transform_16, window_bounds = array<i64: 1, 32>}, {transform_indices = @transform_17, window_bounds = array<i64: 16, 128>}]} {
    %c0 = arith.constant 0 : index
    %c0_0 = arith.constant 0 : index
    %0 = vector.load %arg1[%c0, %c0_0] : memref<16x16xf32, #tpu.memory_space<vmem>>, vector<16x16xf32>
    %1 = arith.truncf %0 : vector<16x16xf32> to vector<16x16xbf16>
    %c0_1 = arith.constant 0 : index
    %c0_2 = arith.constant 0 : index
    %2 = vector.load %arg2[%c0_1, %c0_2] : memref<16x32xf32, #tpu.memory_space<vmem>>, vector<16x32xf32>
    %3 = arith.truncf %2 : vector<16x32xf32> to vector<16x32xbf16>
    %c0_3 = arith.constant 0 : index
    %c0_4 = arith.constant 0 : index
    %4 = vector.load %arg4[%c0_3, %c0_4] : memref<16x256xbf16, #tpu.memory_space<vmem>>, vector<16x256xbf16>
    %cst = arith.constant dense<0.000000e+00> : vector<16x256xf32>
    %5 = tpu.matmul %1, %4, %cst {dimension_numbers = #tpu.dot_dimension_numbers<[1], [0], [0], [1], [0, 0, 1, 1], [], []>} : vector<16x16xbf16>, vector<16x256xbf16>, vector<16x256xf32> -> vector<16x256xf32>
    %c0_5 = arith.constant 0 : index
    %c0_6 = arith.constant 0 : index
    %6 = vector.load %arg5[%c0_5, %c0_6] : memref<32x256xbf16, #tpu.memory_space<vmem>>, vector<32x256xbf16>
    %cst_7 = arith.constant dense<0.000000e+00> : vector<16x256xf32>
    %7 = tpu.matmul %3, %6, %cst_7 {dimension_numbers = #tpu.dot_dimension_numbers<[1], [0], [0], [1], [0, 0, 1, 1], [], []>} : vector<16x32xbf16>, vector<32x256xbf16>, vector<16x256xf32> -> vector<16x256xf32>
    %8 = arith.addf %5, %7 : vector<16x256xf32>
    %c0_8 = arith.constant 0 : index
    %c0_9 = arith.constant 0 : index
    %9 = vector.load %arg6[%c0_8, %c0_9] : memref<1x256xf32, #tpu.memory_space<vmem>>, vector<1x256xf32>
    %10 = vector.broadcast %9 : vector<1x256xf32> to vector<16x256xf32>
    %11 = arith.addf %8, %10 : vector<16x256xf32>
    %cst_10 = arith.constant 0.000000e+00 : f32
    %12 = vector.broadcast %cst_10 : f32 to vector<16x256xf32>
    %13 = arith.maximumf %11, %12 : vector<16x256xf32>
    %14 = arith.truncf %13 : vector<16x256xf32> to vector<16x256xbf16>
    %c0_11 = arith.constant 0 : index
    %c0_12 = arith.constant 0 : index
    %15 = vector.load %arg7[%c0_11, %c0_12] : memref<256x128xbf16, #tpu.memory_space<vmem>>, vector<256x128xbf16>
    %cst_13 = arith.constant dense<0.000000e+00> : vector<16x128xf32>
    %16 = tpu.matmul %14, %15, %cst_13 {dimension_numbers = #tpu.dot_dimension_numbers<[1], [0], [0], [1], [0, 0, 1, 1], [], []>} : vector<16x256xbf16>, vector<256x128xbf16>, vector<16x128xf32> -> vector<16x128xf32>
    %c0_14 = arith.constant 0 : index
    %c0_15 = arith.constant 0 : index
    %17 = vector.load %arg8[%c0_14, %c0_15] : memref<1x128xf32, #tpu.memory_space<vmem>>, vector<1x128xf32>
    %18 = vector.broadcast %17 : vector<1x128xf32> to vector<16x128xf32>
    %19 = arith.addf %16, %18 : vector<16x128xf32>
    %cst_16 = arith.constant 0.000000e+00 : f32
    %20 = vector.broadcast %cst_16 : f32 to vector<16x128xf32>
    %21 = arith.maximumf %19, %20 : vector<16x128xf32>
    %22 = arith.truncf %21 : vector<16x128xf32> to vector<16x128xbf16>
    %c0_17 = arith.constant 0 : index
    %c0_18 = arith.constant 0 : index
    %23 = vector.load %arg9[%c0_17, %c0_18] : memref<128x64xbf16, #tpu.memory_space<vmem>>, vector<128x64xbf16>
    %cst_19 = arith.constant dense<0.000000e+00> : vector<16x64xf32>
    %24 = tpu.matmul %22, %23, %cst_19 {dimension_numbers = #tpu.dot_dimension_numbers<[1], [0], [0], [1], [0, 0, 1, 1], [], []>} : vector<16x128xbf16>, vector<128x64xbf16>, vector<16x64xf32> -> vector<16x64xf32>
    %c0_20 = arith.constant 0 : index
    %c0_21 = arith.constant 0 : index
    %25 = vector.load %arg10[%c0_20, %c0_21] : memref<1x64xf32, #tpu.memory_space<vmem>>, vector<1x64xf32>
    %26 = vector.broadcast %25 : vector<1x64xf32> to vector<16x64xf32>
    %27 = arith.addf %24, %26 : vector<16x64xf32>
    %28 = vector.extract_strided_slice %27 {offsets = [0, 0], sizes = [16, 32], strides = [1, 1]} : vector<16x64xf32> to vector<16x32xf32>
    %29 = vector.extract_strided_slice %27 {offsets = [0, 32], sizes = [16, 32], strides = [1, 1]} : vector<16x64xf32> to vector<16x32xf32>
    %30 = math.exp %29 : vector<16x32xf32>
    %c0_22 = arith.constant 0 : index
    %c0_23 = arith.constant 0 : index
    %31 = vector.load %arg3[%c0_22, %c0_23] : memref<16x32xf32, #tpu.memory_space<vmem>>, vector<16x32xf32>
    %32 = arith.mulf %30, %31 : vector<16x32xf32>
    %33 = arith.addf %28, %32 : vector<16x32xf32>
    %c0_24 = arith.constant 0 : index
    %c0_25 = arith.constant 0 : index
    %34 = vector.load %arg11[%c0_24, %c0_25] : memref<16x128xbf16, #tpu.memory_space<vmem>>, vector<16x128xbf16>
    %cst_26 = arith.constant dense<0.000000e+00> : vector<16x128xf32>
    %35 = tpu.matmul %1, %34, %cst_26 {dimension_numbers = #tpu.dot_dimension_numbers<[1], [0], [0], [1], [0, 0, 1, 1], [], []>} : vector<16x16xbf16>, vector<16x128xbf16>, vector<16x128xf32> -> vector<16x128xf32>
    %36 = arith.truncf %33 : vector<16x32xf32> to vector<16x32xbf16>
    %c0_27 = arith.constant 0 : index
    %c0_28 = arith.constant 0 : index
    %37 = vector.load %arg12[%c0_27, %c0_28] : memref<32x128xbf16, #tpu.memory_space<vmem>>, vector<32x128xbf16>
    %cst_29 = arith.constant dense<0.000000e+00> : vector<16x128xf32>
    %38 = tpu.matmul %36, %37, %cst_29 {dimension_numbers = #tpu.dot_dimension_numbers<[1], [0], [0], [1], [0, 0, 1, 1], [], []>} : vector<16x32xbf16>, vector<32x128xbf16>, vector<16x128xf32> -> vector<16x128xf32>
    %39 = arith.addf %35, %38 : vector<16x128xf32>
    %c0_30 = arith.constant 0 : index
    %c0_31 = arith.constant 0 : index
    %40 = vector.load %arg13[%c0_30, %c0_31] : memref<1x128xf32, #tpu.memory_space<vmem>>, vector<1x128xf32>
    %41 = vector.broadcast %40 : vector<1x128xf32> to vector<16x128xf32>
    %42 = arith.addf %39, %41 : vector<16x128xf32>
    %cst_32 = arith.constant 0.000000e+00 : f32
    %43 = vector.broadcast %cst_32 : f32 to vector<16x128xf32>
    %44 = arith.maximumf %42, %43 : vector<16x128xf32>
    %45 = arith.truncf %44 : vector<16x128xf32> to vector<16x128xbf16>
    %c0_33 = arith.constant 0 : index
    %c0_34 = arith.constant 0 : index
    %46 = vector.load %arg14[%c0_33, %c0_34] : memref<128x256xbf16, #tpu.memory_space<vmem>>, vector<128x256xbf16>
    %cst_35 = arith.constant dense<0.000000e+00> : vector<16x256xf32>
    %47 = tpu.matmul %45, %46, %cst_35 {dimension_numbers = #tpu.dot_dimension_numbers<[1], [0], [0], [1], [0, 0, 1, 1], [], []>} : vector<16x128xbf16>, vector<128x256xbf16>, vector<16x256xf32> -> vector<16x256xf32>
    %c0_36 = arith.constant 0 : index
    %c0_37 = arith.constant 0 : index
    %48 = vector.load %arg15[%c0_36, %c0_37] : memref<1x256xf32, #tpu.memory_space<vmem>>, vector<1x256xf32>
    %49 = vector.broadcast %48 : vector<1x256xf32> to vector<16x256xf32>
    %50 = arith.addf %47, %49 : vector<16x256xf32>
    %cst_38 = arith.constant 0.000000e+00 : f32
    %51 = vector.broadcast %cst_38 : f32 to vector<16x256xf32>
    %52 = arith.maximumf %50, %51 : vector<16x256xf32>
    %53 = arith.truncf %52 : vector<16x256xf32> to vector<16x256xbf16>
    %c0_39 = arith.constant 0 : index
    %c0_40 = arith.constant 0 : index
    %54 = vector.load %arg16[%c0_39, %c0_40] : memref<256x32xbf16, #tpu.memory_space<vmem>>, vector<256x32xbf16>
    %cst_41 = arith.constant dense<0.000000e+00> : vector<16x32xf32>
    %55 = tpu.matmul %53, %54, %cst_41 {dimension_numbers = #tpu.dot_dimension_numbers<[1], [0], [0], [1], [0, 0, 1, 1], [], []>} : vector<16x256xbf16>, vector<256x32xbf16>, vector<16x32xf32> -> vector<16x32xf32>
    %c0_42 = arith.constant 0 : index
    %c0_43 = arith.constant 0 : index
    %56 = vector.load %arg17[%c0_42, %c0_43] : memref<1x32xf32, #tpu.memory_space<vmem>>, vector<1x32xf32>
    %57 = vector.broadcast %56 : vector<1x32xf32> to vector<16x32xf32>
    %58 = arith.addf %55, %57 : vector<16x32xf32>
    %59 = math.tanh %58 : vector<16x32xf32>
    %cst_44 = arith.constant 1.000000e+00 : f32
    %60 = vector.broadcast %cst_44 : f32 to vector<16x32xf32>
    %61 = arith.mulf %60, %59 : vector<16x32xf32>
    %62 = arith.truncf %61 : vector<16x32xf32> to vector<16x32xbf16>
    %63 = arith.truncf %28 : vector<16x32xf32> to vector<16x32xbf16>
    %64 = arith.truncf %30 : vector<16x32xf32> to vector<16x32xbf16>
    %cst_45 = arith.constant 0.000000e+00 : bf16
    %65 = vector.broadcast %cst_45 : bf16 to vector<16x32xbf16>
    %66 = tpu.concatenate %62, %63, %64, %65 in 1 : vector<16x32xbf16>, vector<16x32xbf16>, vector<16x32xbf16>, vector<16x32xbf16> -> vector<16x128xbf16>
    %c0_46 = arith.constant 0 : index
    %c0_47 = arith.constant 0 : index
    %67 = vector.load %arg18[%c0_46, %c0_47] : memref<16x128xbf16, #tpu.memory_space<vmem>>, vector<16x128xbf16>
    tpu.vector_store %arg18[%c0_46, %c0_47], %66 {strides = array<i32>} : memref<16x128xbf16, #tpu.memory_space<vmem>>, vector<16x128xbf16>,
    return
  }
  func.func @transform_0(%arg0: i32) -> (i32, i32) {
    %c0_i32 = arith.constant 0 : i32
    %c0_i32_0 = arith.constant 0 : i32
    return %arg0, %c0_i32 : i32, i32
  }
  func.func @transform_1(%arg0: i32) -> (i32, i32) {
    %c0_i32 = arith.constant 0 : i32
    %c0_i32_0 = arith.constant 0 : i32
    return %arg0, %c0_i32 : i32, i32
  }
  func.func @transform_2(%arg0: i32) -> (i32, i32) {
    %c0_i32 = arith.constant 0 : i32
    %c0_i32_0 = arith.constant 0 : i32
    return %arg0, %c0_i32 : i32, i32
  }
  func.func @transform_3(%arg0: i32) -> (i32, i32) {
    %c0_i32 = arith.constant 0 : i32
    %c0_i32_0 = arith.constant 0 : i32
    %c0_i32_1 = arith.constant 0 : i32
    return %c0_i32, %c0_i32_0 : i32, i32
  }
  func.func @transform_4(%arg0: i32) -> (i32, i32) {
    %c0_i32 = arith.constant 0 : i32
    %c0_i32_0 = arith.constant 0 : i32
    %c0_i32_1 = arith.constant 0 : i32
    return %c0_i32, %c0_i32_0 : i32, i32
  }
  func.func @transform_5(%arg0: i32) -> (i32, i32) {
    %c0_i32 = arith.constant 0 : i32
    %c0_i32_0 = arith.constant 0 : i32
    %c0_i32_1 = arith.constant 0 : i32
    return %c0_i32, %c0_i32_0 : i32, i32
  }
  func.func @transform_6(%arg0: i32) -> (i32, i32) {
    %c0_i32 = arith.constant 0 : i32
    %c0_i32_0 = arith.constant 0 : i32
    %c0_i32_1 = arith.constant 0 : i32
    return %c0_i32, %c0_i32_0 : i32, i32
  }
  func.func @transform_7(%arg0: i32) -> (i32, i32) {
    %c0_i32 = arith.constant 0 : i32
    %c0_i32_0 = arith.constant 0 : i32
    %c0_i32_1 = arith.constant 0 : i32
    return %c0_i32, %c0_i32_0 : i32, i32
  }
  func.func @transform_8(%arg0: i32) -> (i32, i32) {
    %c0_i32 = arith.constant 0 : i32
    %c0_i32_0 = arith.constant 0 : i32
    %c0_i32_1 = arith.constant 0 : i32
    return %c0_i32, %c0_i32_0 : i32, i32
  }
  func.func @transform_9(%arg0: i32) -> (i32, i32) {
    %c0_i32 = arith.constant 0 : i32
    %c0_i32_0 = arith.constant 0 : i32
    %c0_i32_1 = arith.constant 0 : i32
    return %c0_i32, %c0_i32_0 : i32, i32
  }
  func.func @transform_10(%arg0: i32) -> (i32, i32) {
    %c0_i32 = arith.constant 0 : i32
    %c0_i32_0 = arith.constant 0 : i32
    %c0_i32_1 = arith.constant 0 : i32
    return %c0_i32, %c0_i32_0 : i32, i32
  }
  func.func @transform_11(%arg0: i32) -> (i32, i32) {
    %c0_i32 = arith.constant 0 : i32
    %c0_i32_0 = arith.constant 0 : i32
    %c0_i32_1 = arith.constant 0 : i32
    return %c0_i32, %c0_i32_0 : i32, i32
  }
  func.func @transform_12(%arg0: i32) -> (i32, i32) {
    %c0_i32 = arith.constant 0 : i32
    %c0_i32_0 = arith.constant 0 : i32
    %c0_i32_1 = arith.constant 0 : i32
    return %c0_i32, %c0_i32_0 : i32, i32
  }
  func.func @transform_13(%arg0: i32) -> (i32, i32) {
    %c0_i32 = arith.constant 0 : i32
    %c0_i32_0 = arith.constant 0 : i32
    %c0_i32_1 = arith.constant 0 : i32
    return %c0_i32, %c0_i32_0 : i32, i32
  }
  func.func @transform_14(%arg0: i32) -> (i32, i32) {
    %c0_i32 = arith.constant 0 : i32
    %c0_i32_0 = arith.constant 0 : i32
    %c0_i32_1 = arith.constant 0 : i32
    return %c0_i32, %c0_i32_0 : i32, i32
  }
  func.func @transform_15(%arg0: i32) -> (i32, i32) {
    %c0_i32 = arith.constant 0 : i32
    %c0_i32_0 = arith.constant 0 : i32
    %c0_i32_1 = arith.constant 0 : i32
    return %c0_i32, %c0_i32_0 : i32, i32
  }
  func.func @transform_16(%arg0: i32) -> (i32, i32) {
    %c0_i32 = arith.constant 0 : i32
    %c0_i32_0 = arith.constant 0 : i32
    %c0_i32_1 = arith.constant 0 : i32
    return %c0_i32, %c0_i32_0 : i32, i32
  }
  func.func @transform_17(%arg0: i32) -> (i32, i32) {
    %c0_i32 = arith.constant 0 : i32
    %c0_i32_0 = arith.constant 0 : i32
    return %arg0, %c0_i32 : i32, i32
  }
}

</mosaic_0001>

<bundles_post_ra>
// kernel: tpu_custom_call.1
= control target key start
LH: loop header
LB: loop body
LE: loop exit
PB: predicated region body
PF: predicated region fallthrough
CT: control target
= control target key end

     0   :  { %s1991_s0 = inlined_call_operand.hbm [shape: f32[16,16], index: 0, kind: input, shape index: {}]   ;;  %s1992_s1 = inlined_call_operand.hbm [shape: f32[16,32], index: 1, kind: input, shape index: {}]   ;;  %s1993_s2 = inlined_call_operand.hbm [shape: f32[16,32], index: 2, kind: input, shape index: {}]   ;;  %s1994_s3 = inlined_call_operand.hbm [shape: bf16[16,256], index: 3, kind: input, shape index: {}]   ;;  %s1995_s4 = inlined_call_operand.hbm [shape: bf16[32,256], index: 4, kind: input, shape index: {}]   ;;  %s1996_s5 = inlined_call_operand.vmem [shape: f32[1,256], index: 5, kind: input, shape index: {}]   ;;  %s1997_s6 = inlined_call_operand.vmem [shape: bf16[256,128], index: 6, kind: input, shape index: {}]   ;;  %s1998_s7 = inlined_call_operand.hbm [shape: f32[1,128], index: 7, kind: input, shape index: {}]   ;;  %s1999_s8 = inlined_call_operand.vmem [shape: bf16[128,64], index: 8, kind: input, shape index: {}]   ;;  %s2000_s9 = inlined_call_operand.hbm [shape: f32[1,64], index: 9, kind: input, shape index: {}]   ;;  %s2001_s10 = inlined_call_operand.hbm [shape: bf16[16,128], index: 10, kind: input, shape index: {}]   ;;  %s2002_s11 = inlined_call_operand.vmem [shape: bf16[32,128], index: 11, kind: input, shape index: {}]   ;;  %s2003_s12 = inlined_call_operand.vmem [shape: f32[1,128], index: 12, kind: input, shape index: {}]   ;;  %s2004_s13 = inlined_call_operand.vmem [shape: bf16[128,256], index: 13, kind: input, shape index: {}]   ;;  %s2005_s14 = inlined_call_operand.vmem [shape: f32[1,256], index: 14, kind: input, shape index: {}]   ;;  %s2006_s15 = inlined_call_operand.vmem [shape: bf16[256,32], index: 15, kind: input, shape index: {}]   ;;  %s2007_s16 = inlined_call_operand.vmem [shape: f32[1,32], index: 16, kind: input, shape index: {}]   ;;  %s2008_s17 = inlined_call_operand.hbm [shape: bf16[16,128], index: 17, kind: output, shape index: {}]  }
   0x1   :  { %2009 = sst [smem:[#allocation23_spill]] %s1991_s0 }
   0x2   :  { %2010 = sst [smem:[#allocation24_spill]] %s1992_s1 }
   0x3   :  { %22 = vsyncpa [#allocation3], 0 }
   0x4   :  { %23 = vsyncpa [#allocation6], 0 }
   0x5   :  { %24 = vsyncpa [#allocation9], 0 }
   0x6   :  { %25 = vsyncpa [#allocation12], 0 }
   0x7   :  { %26 = vsyncpa [#allocation15], 0 }
   0x8   :  { %27 = vsyncpa [#allocation4], 0  ;;  %s1604_s24 = smov [#allocation5]   ;;  %s1605_s26 = smov [#allocation8]  }
   0x9   :  { %s45_s25 = sshll.u32 %s1604_s24, 4  ;;  %s69_s27 = sshll.u32 %s1605_s26, 4  ;;  %s46_s25 = int_to_ptr.vmem [resolvable:$true] %s45_s25  ;;  %s70_s27 = int_to_ptr.vmem [resolvable:$true] %s69_s27 }
   0xa   :  { %s1420_s28 = scalar_lea.vmem %s46_s25, 256  ;;  %p1425_p1 = scmp.lt.s32.totalorder %s46_s25, %s46_s25 }
   0xb   :  { %p1421_p0 = scmp.ne.s32.totalorder %s46_s25, %s1420_s28  ;;  %p1426_p2 = scmp.lt.s32.totalorder %s1420_s28, %s1420_s28 }
   0xd   :  { %p1427_p3 = por %p1426_p2, %p1425_p1 }
   0xf   :  { %p1428_p4 = pnand %p1427_p3, %p1421_p0 }
  0x11   :  { %1431 = shalt.err (!%p1428_p4)
}
  0x12   :  { %s1606_s29 = smov 128   ;;  %s1607_s0 = smov 8  }
  0x13   :  { %s2011_s19 = sld [smem:[#allocation24_spill]]  ;;  %s1440_s1 = scalar_lea.vmem %s70_s27, 256 }
  0x14   :  { %p1441_p5 = scmp.ne.s32.totalorder %s70_s27, %s1440_s1  ;;  %p1445_p6 = scmp.lt.s32.totalorder %s70_s27, %s70_s27 }
  0x15   :  { %p1446_p7 = scmp.lt.s32.totalorder %s1440_s1, %s1440_s1 }
  0x17   :  { %p1447_p8 = por %p1446_p7, %p1445_p6 }
  0x19   :  { %51 = dma.hbm_to_vmem [thread:$0]  %s2011_s19, 256, %s46_s25, [#allocation6], %s1606_s29, %s1606_s29, %s1607_s0  }
  0x1a   :  { %p1448_p9 = pnand %p1447_p8, %p1441_p5 }
  0x1c   :  { %1451 = shalt.err (!%p1448_p9)
}
  0x1d   :  { %75 = dma.hbm_to_vmem [thread:$0]  %s1994_s3, 256, %s70_s27, [#allocation9], %s1606_s29, %s1606_s29, %s1607_s0  }
  0x1e   :  { %s1608_s22 = smov [#allocation11]   ;;  %s1609_s24 = smov [#allocation2]  }
  0x1f   :  { %s98_s23 = sshll.u32 %s1608_s22, 4  ;;  %s33_s26 = sshll.u32 %s1609_s24, 4  ;;  %s99_s23 = int_to_ptr.vmem [resolvable:$true] %s98_s23  ;;  %s34_s26 = int_to_ptr.vmem [resolvable:$true] %s33_s26 }
  0x20   :  { %s1460_s25 = scalar_lea.vmem %s99_s23, 16  ;;  %s1464_s28 = scalar_lea.vmem %s99_s23, 32 }
  0x21   :  { %p1461_p10 = scmp.ne.s32.totalorder %s99_s23, %s1460_s25  ;;  %p1465_p11 = scmp.lt.s32.totalorder %s99_s23, %s99_s23 }
  0x22   :  { %p1466_p12 = scmp.lt.s32.totalorder %s1464_s28, %s1460_s25 }
  0x24   :  { %p1467_p13 = por %p1466_p12, %p1465_p11 }
  0x26   :  { %p1468_p0 = pnand %p1467_p13, %p1461_p10 }
  0x28   :  { %1471 = shalt.err (!%p1468_p0)
}
  0x29   :  { %101 = dma.hbm_to_vmem [thread:$0]  %s1998_s7, 16, %s99_s23, [#allocation12]  }
  0x2a   :  { %s1480_s19 = scalar_lea.vmem %s34_s26, 256  ;;  %p1485_p2 = scmp.lt.s32.totalorder %s34_s26, %s34_s26 }
  0x2b   :  { %p1481_p1 = scmp.ne.s32.totalorder %s34_s26, %s1480_s19  ;;  %p1486_p3 = scmp.lt.s32.totalorder %s1480_s19, %s1480_s19 }
  0x2d   :  { %p1487_p4 = por %p1486_p3, %p1485_p2 }
  0x2f   :  { %p1488_p5 = pnand %p1487_p4, %p1481_p1 }
  0x31   :  { %1491 = shalt.err (!%p1488_p5)
}
  0x32   :  { %s2012_s1 = sld [smem:[#allocation23_spill]]  ;;  %s1610_s20 = smov [#allocation7]  }
  0x33   :  { %s57_s21 = sshll.u32 %s1610_s20, 4  ;;  %s1611_s22 = smov [#allocation10]   ;;  %s58_s21 = int_to_ptr.vmem [resolvable:$true] %s57_s21 }
  0x34   :  { %s81_s24 = sshll.u32 %s1611_s22, 4  ;;  %s1500_s7 = scalar_lea.vmem %s58_s21, 256  ;;  %s82_s24 = int_to_ptr.vmem [resolvable:$true] %s81_s24 }
  0x35   :  { %p1501_p6 = scmp.ne.s32.totalorder %s58_s21, %s1500_s7  ;;  %p1505_p7 = scmp.lt.s32.totalorder %s58_s21, %s58_s21 }
  0x36   :  { %p1506_p8 = scmp.lt.s32.totalorder %s1500_s7, %s1500_s7 }
  0x38   :  { %39 = dma.hbm_to_vmem [thread:$0]  %s2012_s1, 256, %s34_s26, [#allocation3], %s1606_s29, %s1606_s29, %s1607_s0  }
  0x39   :  { %p1507_p9 = por %p1506_p8, %p1505_p7 }
  0x3b   :  { %p1508_p10 = pnand %p1507_p9, %p1501_p6 }
  0x3d   :  { %1511 = shalt.err (!%p1508_p10)
}
  0x3e   :  { %63 = dma.hbm_to_vmem [thread:$0]  %s1993_s2, 256, %s58_s21, [#allocation6], %s1606_s29, %s1606_s29, %s1607_s0  }
  0x3f   :  { %s1520_s26 = scalar_lea.vmem %s82_s24, 512  ;;  %p1525_p12 = scmp.lt.s32.totalorder %s82_s24, %s82_s24 }
  0x40   :  { %p1521_p11 = scmp.ne.s32.totalorder %s82_s24, %s1520_s26  ;;  %p1526_p13 = scmp.lt.s32.totalorder %s1520_s26, %s1520_s26 }
  0x42   :  { %p1527_p0 = por %p1526_p13, %p1525_p12 }
  0x44   :  { %p1528_p1 = pnand %p1527_p0, %p1521_p11 }
  0x46   :  { %1531 = shalt.err (!%p1528_p1)
}
  0x47   :  { %87 = dma.hbm_to_vmem [thread:$0]  %s1995_s4, 512, %s82_s24, [#allocation9], %s1606_s29, %s1606_s29, %s1607_s0  }
  0x48   :  { %s1612_s18 = smov [#allocation13]   ;;  %s1613_s3 = smov [#allocation14]  }
  0x49   :  { %s110_s19 = sshll.u32 %s1612_s18, 4  ;;  %s119_s27 = sshll.u32 %s1613_s3, 4  ;;  %s111_s19 = int_to_ptr.vmem [resolvable:$true] %s110_s19  ;;  %s120_s27 = int_to_ptr.vmem [resolvable:$true] %s119_s27 }
  0x4a   :  { %s1540_s2 = scalar_lea.vmem %s111_s19, 16  ;;  %s1544_s1 = scalar_lea.vmem %s111_s19, 32 }
  0x4b   :  { %p1541_p2 = scmp.ne.s32.totalorder %s111_s19, %s1540_s2  ;;  %p1545_p3 = scmp.lt.s32.totalorder %s111_s19, %s111_s19 }
  0x4c   :  { %p1546_p4 = scmp.lt.s32.totalorder %s1544_s1, %s1540_s2 }
  0x4e   :  { %p1547_p5 = por %p1546_p4, %p1545_p3 }
  0x50   :  { %p1548_p6 = pnand %p1547_p5, %p1541_p2 }
  0x52   :  { %1551 = shalt.err (!%p1548_p6)
}
  0x53   :  { %113 = dma.hbm_to_vmem [thread:$0]  %s2000_s9, 16, %s111_s19, [#allocation12]  }
  0x54   :  { %s1560_s22 = scalar_lea.vmem %s120_s27, 128  ;;  %p1565_p8 = scmp.lt.s32.totalorder %s120_s27, %s120_s27 }
  0x55   :  { %p1561_p7 = scmp.ne.s32.totalorder %s120_s27, %s1560_s22  ;;  %p1566_p9 = scmp.lt.s32.totalorder %s1560_s22, %s1560_s22 }
  0x57   :  { %p1567_p10 = por %p1566_p9, %p1565_p8 }
  0x59   :  { %p1568_p11 = pnand %p1567_p10, %p1561_p7 }
  0x5b   :  { %1571 = shalt.err (!%p1568_p11)
}
  0x5c   :  { %s1614_s4 = smov 64   ;;  %s1615_s29 = smov 4  }
  0x5d   :  { %125 = dma.hbm_to_vmem [thread:$0]  %s2001_s10, 128, %s120_s27, [#allocation15], %s1614_s4, %s1614_s4, %s1615_s29  }
  0x5e   :  { %1592 = dma.done.wait [#allocation3], 256  }
  0x5f   :  { %1593 = vsyncadd [#allocation3], 4294967040 }
  0x60   :  { %1594 = dma.done.wait [#allocation6], 512  }
  0x61   :  { %1595 = vsyncadd [#allocation6], 4294966784 }
  0x62   :  { %1596 = dma.done.wait [#allocation9], 768  }
  0x63   :  { %1597 = vsyncadd [#allocation9], 4294966528 }
  0x64   :  { %1598 = dma.done.wait [#allocation12], 32  }
  0x65   :  { %1599 = vsyncadd [#allocation12], 4294967264 }
  0x66   :  { %1600 = dma.done.wait [#allocation15], 128  }
  0x67   :  { %1601 = vsyncadd [#allocation15], 4294967168  ;;  %v1616_v0 = vmov 0   ;;  %v1328_v1 = vld [vmem:[#allocation10 + $0x14] ss:$8 sps:$4 sm:$0xff]   ;;  %v163_v6 = vld [vmem:[#allocation2] sm:$0xff]  ;;  %v301_v34 = vlaneseq }
  0x68   :  { %288 = vmatprep.mubr.bf16.mxu1 %v1616_v0  ;;  %231 = vmatprep.mubr.bf16.mxu0 %v1616_v0  ;;  %v1330_v2 = vld [vmem:[#allocation8 + $0x4] ss:$8 sps:$4 sm:$0xff]   ;;  %v1332_v3 = vld [vmem:[#allocation10 + $0x10] ss:$8 sps:$4 sm:$0xff]   ;;  %v1334_v5 = vld [vmem:[#allocation10 + $0x4] ss:$8 sps:$4 sm:$0xff]  }
  0x69   :  { %211 = vmatprep.subr.bf16.mxu0 %v1328_v1  ;;  %v1333_v4 = vld [vmem:[#allocation8] ss:$8 sps:$4 sm:$0xff]   ;;  %270 = vmatprep.subr.bf16.mxu1 %v1330_v2  ;;  %v164_v7 = vld [vmem:[#allocation2 + $0x8] sm:$0xff]  ;;  %vm252_vm0 = vcmask 130048   ;;  %vm195_vm1 = vcmask 261120   ;;  %v1343_v19 = vld [vmem:[%s1997_s6 + $0x60] sm:$0xff]  }
  0x6a   :  { %212 = vmatpush1.bf16.msra.mxu0 %v1332_v3  ;;  %271 = vmatpush1.bf16.msra.mxu1 %v1333_v4  ;;  %v1336_v8 = vld [vmem:[#allocation10] ss:$8 sps:$4 sm:$0xff]   ;;  %v166_v9 = vld [vmem:[#allocation5] sm:$0xff]  ;;  %v1756_v10 = vpack.c.bf16 %v164_v7, %v163_v6  ;;  %v167_v11 = vld [vmem:[#allocation5 + $0x8] sm:$0xff]  ;;  %v1617_v30 = vmov 0.0   ;;  %v1827_v36 = vshrl.u32 %v301_v34, 7 }
  0x6b   :  { %213 = vmatprep.subr.bf16.mxu0 %v1334_v5  ;;  %v1337_v12 = vld [vmem:[%s1997_s6 + $0x78] sm:$0xff]   ;;  %v168_v13 = vpack.c.bf16 %v167_v11, %v166_v9  ;;  %v1339_v15 = vld [vmem:[%s1997_s6 + $0x70] sm:$0xff]   ;;  %v1341_v17 = vld [vmem:[%s1997_s6 + $0x68] sm:$0xff]   ;;  %vm1618_vm2 = vmmov 0   ;;  %s1619_s3 = smov 32   ;;  %s1620_s22 = smov 96  }
  0x6c   :  { %v1338_v14 = vld [vmem:[%s1997_s6 + $0x38] sm:$0xff]   ;;  %1218 = vmatprep.subr.bf16.mxu1 %v1337_v12  ;;  %v1340_v16 = vld [vmem:[%s1997_s6 + $0x30] sm:$0xff]   ;;  %v1342_v18 = vld [vmem:[%s1997_s6 + $0x28] sm:$0xff]   ;;  %v307_v38 = vsub.s32 1, %v1827_v36  ;;  %v303_v40 = vsub.s32 0, %v1827_v36  ;;  %vm1107_vm3 = vcmask 523264  }
  0x6d   :  { %1150 = vmatmul.mubr.msk.bf16.vlgmr.msra.gmra.mxu1 %vm252_vm0, %v1756_v10  ;;  %v1344_v20 = vld [vmem:[%s1997_s6 + $0x20] sm:$0xff]   ;;  %v1345_v21 = vld [vmem:[%s1997_s6 + $0x58] sm:$0xff]   ;;  %v1347_v23 = vld [vmem:[%s1997_s6 + $0x50] sm:$0xff]   ;;  %vm1110_vm4 = vcmask 785408   ;;  %s1621_s27 = smov [#allocation16]  }
  0x6e   :  { %214 = vmatpush1.bf16.msra.mxu0 %v1336_v8  ;;  %1219 = vmatpush3.bf16.msra.mxu1 %v1338_v14  ;;  %v1346_v22 = vld [vmem:[%s1997_s6 + $0x18] sm:$0xff]   ;;  %v1348_v24 = vld [vmem:[%s1997_s6 + $0x10] sm:$0xff]   ;;  %v1349_v25 = vld [vmem:[%s1997_s6 + $0x48] sm:$0xff]   ;;  %s1127_s2 = sshll.u32 %s1621_s27, 4  ;;  %s1128_s2 = int_to_ptr.vmem [resolvable:$true] %s1127_s2 }
  0x6f   :  { %1220 = vmatprep.subr.bf16.mxu1 %v1339_v15  ;;  %v1350_v26 = vld [vmem:[%s1997_s6 + $0x8] sm:$0xff]   ;;  %v1351_v27 = vld [vmem:[%s1997_s6 + $0x40] sm:$0xff]   ;;  %v1353_v29 = vld [vmem:[%s1999_s8 + $0x38] sm:$0xff]   ;;  %1276 = vmatprep.subr.bf16.mxu0 %v1617_v30  ;;  %p1577_p13 = scmp.lt.s32.totalorder %s1128_s2, %s1128_s2 }
  0x70   :  { %v1352_v28 = vld [vmem:[%s1997_s6] sm:$0xff]   ;;  %v1354_v31 = vld [vmem:[%s1999_s8 + $0x30] sm:$0xff]   ;;  %v1355_v32 = vld [vmem:[%s1999_s8 + $0x28] sm:$0xff]  }
  0x71   :  { %1147 = vmatmul.mubr.msk.bf16.vlgmr.msra.gmra.mxu0 %vm195_vm1, %v168_v13  ;;  %v1356_v33 = vld [vmem:[%s1999_s8 + $0x20] sm:$0xff]   ;;  %v1357_v63 = vld [vmem:[%s1999_s8 + $0x18] sm:$0xff]   ;;  %v1358_v1 = vld [vmem:[%s1999_s8 + $0x10] sm:$0xff]  }
  0x72   :  { %1221 = vmatpush3.bf16.msra.mxu1 %v1340_v16  ;;  %1277 = vmatpush3.bf16.msra.mxu0 %v1353_v29  ;;  %v299_v41 = vld [vmem:[%s1996_s5] sm:$0x3]  ;;  %v1359_v2 = vld [vmem:[%s1999_s8 + $0x8] sm:$0xff]  }
  0x73   :  { %1222 = vmatprep.subr.bf16.mxu1 %v1341_v17  ;;  %1278 = vmatprep.subr.bf16.mxu0 %v1617_v30  ;;  %v308_v45 = vrot.slane %v299_v41, %v307_v38  ;;  %v304_v47 = vrot.slane %v299_v41, %v303_v40  ;;  %v1360_v3 = vld [vmem:[%s1999_s8] sm:$0xff]   ;;  %v617_v5 = vld [vmem:[#allocation7 + $0x8] sm:$0xff] }
  0x74   :  { %1292 = vmatprep.mubr.msk.bf16.mxu0 %vm1618_vm2, %v1617_v30  ;;  %v616_v4 = vld [vmem:[#allocation7] sm:$0xff] }
  0x75   :  { %620 = vrot.lane.b32.xlu0 %v616_v4, %s1619_s3  ;;  %v1151_v9 = vld [vmem:[#allocation11] ss:$0 sm:$0xff]  ;;  %v1390_v4 = vld [vmem:[%s2006_s15 + $0x70] sm:$0xff]  }
  0x76   :  { %1223 = vmatpush3.bf16.msra.mxu1 %v1342_v18  ;;  %1279 = vmatpush3.bf16.msra.mxu0 %v1354_v31  ;;  %v1362_v31 = vld [vmem:[%s2002_s11 + $0x8] sm:$0xff]   ;;  %v1199_v36 = vld [vmem:[%s2007_s16] ss:$0 sm:$0xff]  ;;  %s1572_s16 = scalar_lea.vmem %s1128_s2, 128 }
  0x77   :  { %1224 = vmatprep.subr.bf16.mxu1 %v1343_v19  ;;  %1280 = vmatprep.subr.bf16.mxu0 %v1617_v30  ;;  %v1361_v19 = vld [vmem:[#allocation14] sm:$0xff]   ;;  %p1573_p12 = scmp.ne.s32.totalorder %s1128_s2, %s1572_s16  ;;  %p1578_p0 = scmp.lt.s32.totalorder %s1572_s16, %s1572_s16 }
  0x79   :  { %622 = vrot.lane.b32.xlu0 %v617_v5, %s1619_s3  ;;  %v1391_v5 = vld [vmem:[%s2006_s15 + $0x30] sm:$0xff]   ;;  %p1579_p1 = por %p1578_p0, %p1577_p13 }
  0x7a   :  { %1225 = vmatpush3.bf16.msra.mxu1 %v1344_v20  ;;  %1281 = vmatpush3.bf16.msra.mxu0 %v1355_v32  ;;  %v1168_v20 = vld [vmem:[#allocation13] ss:$0 sm:$0xff] }
  0x7b   :  { %1226 = vmatprep.subr.bf16.mxu1 %v1345_v21  ;;  %1282 = vmatprep.subr.bf16.mxu0 %v1617_v30  ;;  %p1580_p2 = pnand %p1579_p1, %p1573_p12 }
  0x7e   :  { %1227 = vmatpush3.bf16.msra.mxu1 %v1346_v22  ;;  %1283 = vmatpush3.bf16.msra.mxu0 %v1356_v33  ;;  %v1366_v33 = vld [vmem:[%s2004_s13 + $0x74] ss:$8 sps:$4 sm:$0xff]  }
  0x7f   :  { %1228 = vmatprep.subr.bf16.mxu1 %v1347_v23  ;;  %1284 = vmatprep.subr.bf16.mxu0 %v1617_v30 }
  0x82   :  { %1229 = vmatpush3.bf16.msra.mxu1 %v1348_v24  ;;  %1285 = vmatpush3.bf16.msra.mxu0 %v1357_v63  ;;  %v1387_v63 = vld [vmem:[%s2004_s13 + $0x4] ss:$8 sps:$4 sm:$0xff]  }
  0x83   :  { %1230 = vmatprep.subr.bf16.mxu1 %v1349_v25  ;;  %1286 = vmatprep.subr.bf16.mxu0 %v1617_v30 }
  0x86   :  { %1231 = vmatpush3.bf16.msra.mxu1 %v1350_v26  ;;  %1287 = vmatpush3.bf16.msra.mxu0 %v1358_v1  ;;  %v1385_v1 = vld [vmem:[%s2004_s13] ss:$8 sps:$4 sm:$0xff]  }
  0x87   :  { %1232 = vmatprep.subr.bf16.mxu1 %v1351_v27  ;;  %1288 = vmatprep.subr.bf16.mxu0 %v1617_v30 }
  0x8a   :  { %1233 = vmatpush3.bf16.msra.mxu1 %v1352_v28  ;;  %1289 = vmatpush3.bf16.msra.mxu0 %v1359_v2  ;;  %v1388_v2 = vld [vmem:[%s2006_s15 + $0x78] sm:$0xff]  }
  0x8b   :  { %1296 = vmatprep.subr.bf16.mxu1 %v1617_v30  ;;  %1290 = vmatprep.subr.bf16.mxu0 %v1617_v30 }
  0x8e   :  { %1291 = vmatpush3.bf16.msra.mxu0 %v1360_v3  ;;  %v1389_v3 = vld [vmem:[%s2006_s15 + $0x38] sm:$0xff]  }
  0x8f   :  { %1304 = vmatprep.subr.bf16.mxu0 %v1617_v30 }
  0xe7   :  { %v621_v32 = vpop.permute.xlu0 %620 }
 0x12d   :  { %v290_v35 = vpop.f32.mrf.mxu1 }
 0x12f   :  { %v292_v37 = vpop.f32.mrf.mxu1 }
 0x131   :  { %v233_v39 = vpop.f32.mrf.mxu0  ;;  %v294_v42 = vpop.f32.mrf.mxu1 }
 0x132   :  { %v291_v46 = vadd.f32 %v290_v35, %v233_v39 }
 0x133   :  { %v235_v43 = vpop.f32.mrf.mxu0  ;;  %v296_v50 = vpop.f32.mrf.mxu1 }
 0x134   :  { %v293_v44 = vadd.f32 %v292_v37, %v235_v43  ;;  %v311_v55 = vadd.f32 %v304_v47, %v291_v46  ;;  %v623_v37 = vpop.permute.xlu0 %622  ;;  %v1364_v46 = vld [vmem:[%s2004_s13 + $0x70] ss:$8 sps:$4 sm:$0xff]  }
 0x135   :  { %v237_v48 = vpop.f32.mrf.mxu0 }
 0x136   :  { %v295_v49 = vadd.f32 %v294_v42, %v237_v48  ;;  %v312_v52 = vadd.f32 %v308_v45, %v293_v44  ;;  %v315_v60 = vmax.f32 %v311_v55, 0.0  ;;  %v1369_v48 = vld [vmem:[%s2004_s13 + $0x64] ss:$8 sps:$4 sm:$0xff]  }
 0x137   :  { %v239_v51 = vpop.f32.mrf.mxu0 }
 0x138   :  { %v313_v53 = vadd.f32 %v304_v47, %v295_v49  ;;  %v297_v54 = vadd.f32 %v296_v50, %v239_v51  ;;  %v316_v58 = vmax.f32 %v312_v52, 0.0  ;;  %v1367_v49 = vld [vmem:[%s2004_s13 + $0x60] ss:$8 sps:$4 sm:$0xff]   ;;  %v1372_v50 = vld [vmem:[%s2004_s13 + $0x54] ss:$8 sps:$4 sm:$0xff]  }
 0x139   :  { %v1370_v51 = vld [vmem:[%s2004_s13 + $0x50] ss:$8 sps:$4 sm:$0xff]   ;;  %v1375_v52 = vld [vmem:[%s2004_s13 + $0x44] ss:$8 sps:$4 sm:$0xff]  }
 0x13a   :  { %v314_v56 = vadd.f32 %v308_v45, %v297_v54  ;;  %v317_v57 = vmax.f32 %v313_v53, 0.0  ;;  %v1378_v53 = vld [vmem:[%s2004_s13 + $0x34] ss:$8 sps:$4 sm:$0xff]   ;;  %v1376_v54 = vld [vmem:[%s2004_s13 + $0x30] ss:$8 sps:$4 sm:$0xff]  }
 0x13c   :  { %v318_v59 = vmax.f32 %v314_v56, 0.0  ;;  %v319_v62 = vpack.c.bf16 %v317_v57, %v315_v60  ;;  %v1379_v60 = vld [vmem:[%s2004_s13 + $0x20] ss:$8 sps:$4 sm:$0xff]  }
 0x13e   :  { %v320_v61 = vpack.c.bf16 %v318_v59, %v316_v58  ;;  %v1381_v59 = vld [vmem:[%s2004_s13 + $0x24] ss:$8 sps:$4 sm:$0xff]  }
 0x140   :  { %488 = vmatprep.mubr.bf16.mxu1 %v320_v61  ;;  %v1384_v61 = vld [vmem:[%s2004_s13 + $0x14] ss:$8 sps:$4 sm:$0xff]  }
 0x141   :  { %489 = vmatmul.mubr.bf16.vlgmr.msra.gmra.mxu1 %v319_v62  ;;  %v1382_v62 = vld [vmem:[%s2004_s13 + $0x10] ss:$8 sps:$4 sm:$0xff]  }
 0x142   :  { %1300 = vmatprep.mubr.msk.bf16.mxu1 %vm1618_vm2, %v1617_v30  ;;  %1297 = vmatpush3.bf16.msra.mxu1 %v1362_v31  ;;  %v1403_v31 = vld [vmem:[%s2006_s15] sm:$0xff]  }
 0x143   :  { %1298 = vmatprep.subr.bf16.mxu1 %v1617_v30 }
 0x201   :  { %v1234_v6 = vpop.f32.mrf.mxu1 }
 0x203   :  { %v1235_v7 = vpop.f32.mrf.mxu1 }
 0x204   :  { %v1236_v8 = vadd.f32 %v1235_v7, %v1234_v6  ;;  %v1392_v6 = vld [vmem:[%s2006_s15 + $0x68] sm:$0xff]  }
 0x205   :  { %v1237_v11 = vpop.f32.mrf.mxu1  ;;  %v1393_v7 = vld [vmem:[%s2006_s15 + $0x28] sm:$0xff]  }
 0x206   :  { %v491_v13 = vadd.f32 %v1236_v8, %v1151_v9  ;;  %v1394_v8 = vld [vmem:[%s2006_s15 + $0x60] sm:$0xff]  }
 0x207   :  { %v1238_v12 = vpop.f32.mrf.mxu1 }
 0x208   :  { %v1239_v14 = vadd.f32 %v1238_v12, %v1237_v11  ;;  %v497_v16 = vmax.f32 %v491_v13, 0.0  ;;  %v1396_v11 = vld [vmem:[%s2006_s15 + $0x58] sm:$0xff]  }
 0x209   :  { %v1397_v12 = vld [vmem:[%s2006_s15 + $0x18] sm:$0xff]  }
 0x20a   :  { %v494_v15 = vadd.f32 %v1239_v14, %v1151_v9  ;;  %v1395_v9 = vld [vmem:[%s2006_s15 + $0x20] sm:$0xff]  }
 0x20c   :  { %v498_v17 = vmax.f32 %v494_v15, 0.0  ;;  %v1182_v15 = vld [vmem:[%s2003_s12] ss:$0 sm:$0xff] }
 0x20e   :  { %v499_v18 = vpack.c.bf16 %v498_v17, %v497_v16 }
 0x210   :  { %1293 = vmatmul.mubr.bf16.vlgmr.msra.gmra.mxu0 %v499_v18 }
 0x211   :  { %1306 = vmatprep.mubr.msk.bf16.mxu0 %vm1618_vm2, %v1617_v30  ;;  %1305 = vmatpush3.bf16.msra.mxu0 %v1361_v19 }
 0x212   :  { %1254 = vmatprep.subr.bf16.mxu0 %v1388_v2 }
 0x218   :  { %1307 = vmatmul.mubr.msk.bf16.vlgmr.msra.gmra.mxu0 %vm252_vm0, %v1756_v10  ;;  %v1363_v10 = vld [vmem:[%s2002_s11] sm:$0xff]  }
 0x219   :  { %1299 = vmatpush3.bf16.msra.mxu1 %v1363_v10  ;;  %1255 = vmatpush3.bf16.msra.mxu0 %v1389_v3  ;;  %v776_v10 = vld [vmem:[%s2005_s14] sm:$0x3] }
 0x21a   :  { %868 = vmatprep.subr.bf16.mxu1 %v1366_v33  ;;  %1256 = vmatprep.subr.bf16.mxu0 %v1390_v4  ;;  %v785_v33 = vrot.slane %v776_v10, %v307_v38 }
 0x21d   :  { %1257 = vmatpush3.bf16.msra.mxu0 %v1391_v5 }
 0x21e   :  { %1258 = vmatprep.subr.bf16.mxu0 %v1392_v6 }
 0x221   :  { %1259 = vmatpush3.bf16.msra.mxu0 %v1393_v7 }
 0x222   :  { %1260 = vmatprep.subr.bf16.mxu0 %v1394_v8 }
 0x225   :  { %1261 = vmatpush3.bf16.msra.mxu0 %v1395_v9 }
 0x226   :  { %1262 = vmatprep.subr.bf16.mxu0 %v1396_v11 }
 0x229   :  { %1263 = vmatpush3.bf16.msra.mxu0 %v1397_v12 }
 0x2d0   :  { %v605_v21 = vpop.f32.mrf.mxu0 }
 0x2d1   :  { %v606_v22 = vadd.f32 %v1168_v20, %v605_v21 }
 0x2d2   :  { %v1294_v23 = vpop.f32.mrf.mxu0 }
 0x2d3   :  { %v612_v24 = vmul.f32 1.442695, %v606_v22 }
 0x2d4   :  { %v608_v25 = vpop.f32.mrf.mxu0 }
 0x2d5   :  { %1404 = vpow2.f32 %v612_v24  ;;  %v609_v26 = vadd.f32 %v1168_v20, %v608_v25  ;;  %v1398_v25 = vld [vmem:[%s2006_s15 + $0x50] sm:$0xff]  }
 0x2d6   :  { %v1295_v27 = vpop.f32.mrf.mxu0  ;;  %1264 = vmatprep.subr.bf16.mxu0 %v1398_v25 }
 0x2d7   :  { %v614_v28 = vmul.f32 1.442695, %v609_v26  ;;  %v1096_v29 = vpack.c.bf16 %v609_v26, %v606_v22  ;;  %v1400_v27 = vld [vmem:[%s2006_s15 + $0x48] sm:$0xff]  }
 0x2d8   :  { %v741_v55 = vpop.f32.mrf.mxu0 }
 0x2d9   :  { %1406 = vpow2.f32 %v614_v28  ;;  %1099 = vrot.lane.b32.xlu0 %v1096_v29, %s1619_s3  ;;  %v1401_v28 = vld [vmem:[%s2006_s15 + $0x8] sm:$0xff]   ;;  %v1402_v29 = vld [vmem:[%s2006_s15 + $0x40] sm:$0xff]  }
 0x2da   :  { %v1308_v56 = vpop.f32.mrf.mxu0 }
 0x2dc   :  { %v744_v57 = vpop.f32.mrf.mxu0 }
 0x2de   :  { %v1309_v58 = vpop.f32.mrf.mxu0 }
 0x2e2   :  { %v1405_v34 = vpop.eup %1404 }
 0x2e3   :  { %v626_v35 = vmul.f32 %v1405_v34, %v621_v32 }
 0x2e5   :  { %630 = vrot.lane.b32.xlu1 %v626_v35, %s1620_s22 }
 0x2e6   :  { %v1407_v39 = vpop.eup %1406 }
 0x2e7   :  { %v627_v41 = vmul.f32 %v1407_v39, %v623_v37  ;;  %v1097_v30 = vpack.c.bf16 %v1407_v39, %v1405_v34  ;;  %v781_v34 = vrot.slane %v776_v10, %v303_v40 }
 0x2e9   :  { %632 = vrot.lane.b32.xlu1 %v627_v41, %s1620_s22 }
 0x2ed   :  { %1102 = vrot.lane.b32.xlu1 %v1097_v30, %s1619_s3 }
 0x34b   :  { %v1100_v58 = vpop.permute.xlu0 %1099 }
 0x357   :  { %v631_v42 = vpop.permute.xlu1 %630 }
 0x358   :  { %v636_v44 = vadd.f32 %v631_v42, %v606_v22 }
 0x35b   :  { %v633_v43 = vpop.permute.xlu1 %632 }
 0x35c   :  { %v637_v45 = vadd.f32 %v633_v43, %v609_v26  ;;  %v1399_v26 = vld [vmem:[%s2006_s15 + $0x10] sm:$0xff]  }
 0x35d   :  { %1265 = vmatpush3.bf16.msra.mxu0 %v1399_v26 }
 0x35e   :  { %v640_v47 = vpack.c.bf16 %v637_v45, %v636_v44  ;;  %1266 = vmatprep.subr.bf16.mxu0 %v1400_v27 }
 0x360   :  { %1301 = vmatmul.mubr.msk.bf16.vlgmr.msra.gmra.mxu1 %vm195_vm1, %v640_v47 }
 0x361   :  { %869 = vmatpush1.bf16.msra.mxu1 %v1364_v46  ;;  %900 = vmatprep.mubr.bf16.mxu1 %v1616_v0  ;;  %v1373_v0 = vld [vmem:[%s2004_s13 + $0x40] ss:$8 sps:$4 sm:$0xff]  }
 0x362   :  { %870 = vmatprep.subr.bf16.mxu1 %v1369_v48  ;;  %1267 = vmatpush3.bf16.msra.mxu0 %v1401_v28 }
 0x363   :  { %1268 = vmatprep.subr.bf16.mxu0 %v1402_v29 }
 0x365   :  { %871 = vmatpush1.bf16.msra.mxu1 %v1367_v49 }
 0x366   :  { %872 = vmatprep.subr.bf16.mxu1 %v1372_v50  ;;  %1269 = vmatpush3.bf16.msra.mxu0 %v1403_v31 }
 0x369   :  { %873 = vmatpush1.bf16.msra.mxu1 %v1370_v51 }
 0x36a   :  { %874 = vmatprep.subr.bf16.mxu1 %v1375_v52 }
 0x36d   :  { %875 = vmatpush1.bf16.msra.mxu1 %v1373_v0 }
 0x36e   :  { %876 = vmatprep.subr.bf16.mxu1 %v1378_v53 }
 0x371   :  { %877 = vmatpush1.bf16.msra.mxu1 %v1376_v54 }
 0x372   :  { %878 = vmatprep.subr.bf16.mxu1 %v1381_v59  ;;  %v1103_v59 = vpop.permute.xlu1 %1102 }
 0x375   :  { %879 = vmatpush1.bf16.msra.mxu1 %v1379_v60 }
 0x376   :  { %880 = vmatprep.subr.bf16.mxu1 %v1384_v61 }
 0x379   :  { %881 = vmatpush1.bf16.msra.mxu1 %v1382_v62 }
 0x37a   :  { %882 = vmatprep.subr.bf16.mxu1 %v1387_v63 }
 0x37d   :  { %883 = vmatpush1.bf16.msra.mxu1 %v1385_v1 }
 0x420   :  { %v694_v13 = vpop.f32.mrf.mxu1 }
 0x421   :  { %v742_v14 = vadd.f32 %v741_v55, %v694_v13 }
 0x422   :  { %v1302_v16 = vpop.f32.mrf.mxu1 }
 0x423   :  { %v755_v18 = vadd.f32 %v1182_v15, %v742_v14 }
 0x424   :  { %v697_v17 = vpop.f32.mrf.mxu1 }
 0x425   :  { %v745_v19 = vadd.f32 %v744_v57, %v697_v17  ;;  %v757_v22 = vmax.f32 %v755_v18, 0.0 }
 0x426   :  { %v1303_v20 = vpop.f32.mrf.mxu1 }
 0x427   :  { %v756_v21 = vadd.f32 %v1182_v15, %v745_v19 }
 0x429   :  { %v758_v23 = vmax.f32 %v756_v21, 0.0 }
 0x42b   :  { %v759_v24 = vpack.c.bf16 %v758_v23, %v757_v22 }
 0x42d   :  { %901 = vmatmul.mubr.bf16.vlgmr.msra.gmra.mxu1 %v759_v24 }
 0x4ed   :  { %v902_v32 = vpop.f32.mrf.mxu1 }
 0x4ee   :  { %v903_v30 = vadd.f32 %v902_v32, %v781_v34 }
 0x4ef   :  { %v904_v35 = vpop.f32.mrf.mxu1 }
 0x4f0   :  { %v905_v39 = vadd.f32 %v904_v35, %v785_v33  ;;  %v911_v47 = vmax.f32 %v903_v30, 0.0 }
 0x4f1   :  { %v906_v37 = vpop.f32.mrf.mxu1 }
 0x4f2   :  { %v907_v41 = vadd.f32 %v906_v37, %v781_v34  ;;  %v912_v45 = vmax.f32 %v905_v39, 0.0 }
 0x4f3   :  { %v908_v42 = vpop.f32.mrf.mxu1 }
 0x4f4   :  { %v909_v43 = vadd.f32 %v908_v42, %v785_v33  ;;  %v913_v44 = vmax.f32 %v907_v41, 0.0 }
 0x4f6   :  { %v914_v46 = vmax.f32 %v909_v43, 0.0  ;;  %v915_v49 = vpack.c.bf16 %v913_v44, %v911_v47 }
 0x4f8   :  { %v916_v48 = vpack.c.bf16 %v914_v46, %v912_v45 }
 0x4fa   :  { %1084 = vmatprep.mubr.bf16.mxu0 %v916_v48 }
 0x4fb   :  { %1085 = vmatmul.mubr.bf16.vlgmr.msra.gmra.mxu0 %v915_v49 }
 0x5bb   :  { %v1270_v50 = vpop.f32.mrf.mxu0 }
 0x5bd   :  { %v1271_v38 = vpop.f32.mrf.mxu0 }
 0x5be   :  { %v1272_v40 = vadd.f32 %v1271_v38, %v1270_v50 }
 0x5bf   :  { %v1273_v51 = vpop.f32.mrf.mxu0 }
 0x5c0   :  { %v1087_v52 = vadd.f32 %v1272_v40, %v1199_v36 }
 0x5c1   :  { %v1274_v0 = vpop.f32.mrf.mxu0 }
 0x5c2   :  { %v1275_v53 = vadd.f32 %v1274_v0, %v1273_v51  ;;  %1408 = vtanh.f32 %v1087_v52 }
 0x5c4   :  { %v1090_v54 = vadd.f32 %v1275_v53, %v1199_v36 }
 0x5c6   :  { %1410 = vtanh.f32 %v1090_v54 }
 0x5cf   :  { %v1409_v55 = vpop.eup %1408 }
 0x5d3   :  { %v1411_v56 = vpop.eup %1410 }
 0x5d4   :  { %v1095_v57 = vpack.c.bf16 %v1411_v56, %v1409_v55 }
 0x5d6   :  { %v1106_v60 = vsel %vm195_vm1, %v1095_v57, %v1100_v58 }
 0x5d7   :  { %v1109_v61 = vsel %vm1107_vm3, %v1106_v60, %v1103_v59 }
 0x5d8   :  { %v1112_v62 = vsel %vm1110_vm4, %v1109_v61, 0 }
 0x5d9   :  { %v1216_v63 = vcombine.low %v1112_v62, %v1112_v62  ;;  %v1217_v1 = vcombine.high %v1112_v62, %v1112_v62 }
 0x5db   :  { %1120 = vst [vmem:[#allocation16] sm:$0xf] %v1216_v63  ;;  %1121 = vst [vmem:[#allocation16 + $0x4] sm:$0xf] %v1217_v1 }
 0x5dc   :  { %1583 = shalt.err (!%p1580_p2)
}
 0x5dd   :  { %1133 = dma.vmem_to_hbm [thread:$0]  %s1128_s2, 128, %s2008_s17, [#allocation4], %s1614_s4, %s1614_s4, %s1615_s29  }
 0x5de   :  { %1602 = dma.done.wait [#allocation4], 128  }
 0x5df   :  { %1603 = vsyncadd [#allocation4], 4294967168 }
 0x5e0   :  { %1137 = vsyncpa [#allocation3], 1 }
 0x5e1   :  { %1138 = vsyncpa [#allocation6], 1 }
 0x5e2   :  { %1139 = vsyncpa [#allocation9], 1 }
 0x5e3   :  { %1140 = vsyncpa [#allocation12], 1 }
 0x5e4   :  { %1141 = vsyncpa [#allocation15], 1 }
 0x5e5   :  { %1142 = vsyncpa [#allocation4], 1 }

</bundles_post_ra>
